<compile_context>
chip_gen: v7x
topology: tpu7x:2x2x1
jax: 0.10.0
libtpu: 0.0.40
codegen_flags: <defaults>
</compile_context>

<pallas_src>
import functools

import jax
import jax.numpy as jnp
from jax.experimental import pallas as pl
from jax.experimental.pallas import tpu as pltpu


def _decoder_kernel(L, B, S, H,
                    tok_ref,                                   # SMEM (T, B) int32
                    hc0_ref, encp_ref, enc2_ref, sel_ref, bsel_ref,
                    embp_ref, attnp_ref, w_ref, b_ref, wfc_ref, bfc_ref,
                    pred_ref, hc_out_ref, attn_ref,
                    hc_scr, egs_scr):
    """One decode step per grid index; weights stay VMEM-resident across steps."""
    f32 = jnp.float32
    t = pl.program_id(0)

    # Initial (hidden ; cell) -> persistent VMEM scratch carried across steps.
    @pl.when(t == 0)
    def _():
        hc_scr[...] = hc0_ref[...]

    # ---- Embedding lookup, pre-projected into gate space ---------------------
    # embp = emb_table @ W_ih[:, :E].T was precomputed, so a row gather directly
    # yields the embedding contribution to the layer-0 gates (no matmul, no
    # concat).  padding_idx=0 is the zeroed row 0 of the table.
    # TODO(synk): switch to a lax.fori_loop gather or a one-hot matmul if B grows.
    for bb in range(B):
        tok = tok_ref[t, bb]
        egs_scr[pl.ds(bb, 1), :] = embp_ref[pl.ds(tok, 1), :]
    egates = egs_scr[...]                                       # (B, 4H)

    # ---- Bahdanau additive attention (enc projection + bias precomputed) -----
    h_top = hc_scr[L - 1][:, :H]                                # (B, H) prev top hidden
    wah = attnp_ref[pl.ds(0, H), :]                             # (H, H)
    v_vec = attnp_ref[pl.ds(H, 1), :]                           # (1, H)
    hid_proj = jnp.dot(h_top, wah, preferred_element_type=f32)  # (B, H)
    hid_bs = jnp.dot(sel_ref[...], hid_proj,
                     preferred_element_type=f32)                # (B*S, H) broadcast rows
    energy = jnp.tanh(encp_ref[...] + hid_bs)                   # (B*S, H)
    scores = jnp.sum(energy * v_vec, axis=1, keepdims=True)     # (B*S, 1) lane reduce
    scores = scores.reshape(B, S)                               # tiny sublane->lane relayout
    scores = scores - jnp.max(scores, axis=1, keepdims=True)
    e = jnp.exp(scores)
    attn = e / jnp.sum(e, axis=1, keepdims=True)                # (B, S) exact softmax
    attn_ref[0] = attn
    # attn_applied[b] = sum_s attn[b,s] * enc[b,s,:] as one (B,B*S)@(B*S,H) dot;
    # the block-diagonal mask bsel is a precomputed constant input.
    attn_wide = jnp.tile(attn, (1, B)) * bsel_ref[...]          # (B, B*S)
    attn_applied = jnp.dot(attn_wide, enc2_ref[...],
                           preferred_element_type=f32)          # (B, H)

    # ---- Stacked LSTM (seq_len == 1; inter-layer dropout is inference no-op) -
    lane = jax.lax.broadcasted_iota(jnp.int32, (B, 4 * H), 1)
    g_mask = (lane >= 2 * H) & (lane < 3 * H)                   # tanh lanes (gate g)

    # Layer 0 input slot-0 is attn_applied (the embedded part arrives via
    # egates); upper layers' slot-0 is the previous layer's output.
    x = attn_applied
    for l in range(L):
        hc_l = hc_scr[l]                                        # (B, 2H) = [h_prev ; c_prev]
        h_prev = hc_l[:, :H]
        c_prev = hc_l[:, H:]
        xh = jnp.concatenate([x, h_prev], axis=1)               # (B, 2H) single-vreg pack
        gates = (jnp.dot(xh, w_ref[l], preferred_element_type=f32)
                 + b_ref[pl.ds(l, 1), :])
        if l == 0:
            gates = gates + egates
        sig = jax.nn.sigmoid(gates)
        th = jnp.tanh(gates)
        acts = jnp.where(g_mask, th, sig)                       # full-vreg activations
        i = acts[:, 0 * H:1 * H]
        f = acts[:, 1 * H:2 * H]
        g = acts[:, 2 * H:3 * H]
        o = acts[:, 3 * H:4 * H]
        c_new = f * c_prev + i * g
        h_new = o * jnp.tanh(c_new)
        hc_scr[l] = jnp.concatenate([h_new, c_new], axis=1)
        x = h_new

    hc_out_ref[...] = hc_scr[...]                               # resident output block

    # ---- Output projection fc_out([output ; attn_applied]), lane-dense Vp ----
    feat = jnp.concatenate([x, attn_applied], axis=1)           # (B, 2H)
    pred_ref[0] = (jnp.dot(feat, wfc_ref[...], preferred_element_type=f32)
                   + bfc_ref[...])


def init_params(key, V, E, H, n_layers, scale=0.1):
    ks = iter(jax.random.split(key, 16 + 4 * n_layers))
    p = {}
    emb = scale * jax.random.normal(next(ks), (V, E), jnp.float32)
    p["emb"] = emb.at[0].set(0.0)                               # padding_idx=0
    p["wah"] = scale * jax.random.normal(next(ks), (H, H), jnp.float32)
    p["wae"] = scale * jax.random.normal(next(ks), (H, H), jnp.float32)
    p["battn"] = scale * jax.random.normal(next(ks), (H,), jnp.float32)
    p["v"] = scale * jax.random.normal(next(ks), (H,), jnp.float32)
    p["lstm"] = []
    for l in range(n_layers):
        in_dim = (E + H) if l == 0 else H
        wih = scale * jax.random.normal(next(ks), (4 * H, in_dim), jnp.float32)
        whh = scale * jax.random.normal(next(ks), (4 * H, H), jnp.float32)
        b_ih = scale * jax.random.normal(next(ks), (4 * H,), jnp.float32)
        b_hh = scale * jax.random.normal(next(ks), (4 * H,), jnp.float32)
        p["lstm"].append((wih, whh, b_ih, b_hh))
    p["wfc"] = scale * jax.random.normal(next(ks), (V, 2 * H), jnp.float32)
    p["bfc"] = scale * jax.random.normal(next(ks), (V,), jnp.float32)
    return p


def precompute_decoder(params, enc):
    """Per-source-sequence precompute (hoisted out of the decode-step kernel)."""
    B, S, H = enc.shape
    V, E = params["emb"].shape
    L = len(params["lstm"])
    Vp = ((V + 127) // 128) * 128
    f32 = jnp.float32

    enc2 = enc.reshape(B * S, H).astype(f32)
    # Bahdanau precompute: enc @ W_ae.T + b_attn is loop-invariant over steps.
    encp = enc2 @ params["wae"].T.astype(f32) + params["battn"].astype(f32)

    # Constant selector matrices (built once here, passed as inputs).
    rows = jnp.arange(B * S) // S
    sel = (rows[:, None] == jnp.arange(B)[None, :]).astype(f32)      # (B*S, B)
    bsel = (rows[None, :] == jnp.arange(B)[:, None]).astype(f32)     # (B, B*S)

    wih0, whh0, bih0, bhh0 = params["lstm"][0]
    # Embedding table pre-projected by the layer-0 embedding-input weights.
    embp = params["emb"].astype(f32) @ wih0[:, :E].T.astype(f32)     # (V, 4H)

    # Packed per-layer LSTM weights: every layer is one (B,2H)@(2H,4H) dot.
    w_list = [jnp.concatenate([wih0[:, E:].T, whh0.T], axis=0)]      # [W_ih_attn ; W_hh]
    b_list = [bih0 + bhh0]
    for (wih, whh, bih, bhh) in params["lstm"][1:]:
        w_list.append(jnp.concatenate([wih.T, whh.T], axis=0))       # [W_ih ; W_hh]
        b_list.append(bih + bhh)
    w_all = jnp.stack(w_list).astype(f32)                            # (L, 2H, 4H)
    b_all = jnp.stack(b_list).astype(f32)                            # (L, 4H)

    # Attention params merged: rows [0:H] = W_ah.T, row H = v.
    attnp = jnp.concatenate([params["wah"].T,
                             params["v"].reshape(1, H)], axis=0).astype(f32)

    # fc_out packed and lane-padded to Vp (dense stores); rows [0:H] multiply
    # the LSTM output, rows [H:2H] multiply attn_applied.
    wfc = jnp.pad(params["wfc"].T, ((0, 0), (0, Vp - V))).astype(f32)
    bfc = jnp.pad(params["bfc"], (0, Vp - V)).reshape(1, Vp).astype(f32)

    return dict(L=L, B=B, S=S, H=H, V=V, Vp=Vp,
                encp=encp, enc2=enc2, sel=sel, bsel=bsel, embp=embp,
                attnp=attnp, w_all=w_all, b_all=b_all, wfc=wfc, bfc=bfc)


def decode_steps(prep, token_plan, hidden, cell):
    """Run T (teacher-forced) decode steps in ONE pallas_call (grid over time)."""
    L, B, S, H, Vp = prep["L"], prep["B"], prep["S"], prep["H"], prep["Vp"]
    T = token_plan.shape[0]
    f32 = jnp.float32

    # Bound the in-kernel VMEM row gather (no runtime OOB check on TPU refs).
    tok = jnp.clip(token_plan.astype(jnp.int32), 0, prep["V"] - 1)    # (T, B)
    hc0 = jnp.concatenate([hidden.astype(f32), cell.astype(f32)], axis=-1)  # (L,B,2H)

    grid_spec = pltpu.PrefetchScalarGridSpec(
        num_scalar_prefetch=1,
        grid=(T,),
        in_specs=[
            pl.BlockSpec((L, B, 2 * H), lambda t, tk: (0, 0, 0)),     # hc0
            pl.BlockSpec((B * S, H), lambda t, tk: (0, 0)),           # encp
            pl.BlockSpec((B * S, H), lambda t, tk: (0, 0)),           # enc2
            pl.BlockSpec((B * S, B), lambda t, tk: (0, 0)),           # sel
            pl.BlockSpec((B, B * S), lambda t, tk: (0, 0)),           # bsel
            pl.BlockSpec(prep["embp"].shape, lambda t, tk: (0, 0)),   # embp (V,4H)
            pl.BlockSpec((H + 1, H), lambda t, tk: (0, 0)),           # attn params
            pl.BlockSpec((L, 2 * H, 4 * H), lambda t, tk: (0, 0, 0)),  # w_all
            pl.BlockSpec((L, 4 * H), lambda t, tk: (0, 0)),           # b_all
            pl.BlockSpec((2 * H, Vp), lambda t, tk: (0, 0)),          # wfc
            pl.BlockSpec((1, Vp), lambda t, tk: (0, 0)),              # bfc
        ],
        out_specs=(
            pl.BlockSpec((1, B, Vp), lambda t, tk: (t, 0, 0)),        # per-step pred
            pl.BlockSpec((L, B, 2 * H), lambda t, tk: (0, 0, 0)),     # final (h ; c)
            pl.BlockSpec((1, B, S), lambda t, tk: (t, 0, 0)),         # per-step attn
        ),
        scratch_shapes=[
            pltpu.VMEM((L, B, 2 * H), f32),   # (hidden ; cell) carried across steps
            pltpu.VMEM((B, 4 * H), f32),      # gathered embedding gate rows
        ],
    )

    kernel = functools.partial(_decoder_kernel, L, B, S, H)
    preds, hc, attns = pl.pallas_call(
        kernel,
        out_shape=(jax.ShapeDtypeStruct((T, B, Vp), f32),
                   jax.ShapeDtypeStruct((L, B, 2 * H), f32),
                   jax.ShapeDtypeStruct((T, B, S), f32)),
        grid_spec=grid_spec,
        compiler_params=pltpu.CompilerParams(
            dimension_semantics=("arbitrary",)),   # time steps form a serial chain
    )(tok, hc0, prep["encp"], prep["enc2"], prep["sel"], prep["bsel"],
      prep["embp"], prep["attnp"], prep["w_all"], prep["b_all"],
      prep["wfc"], prep["bfc"])
    return preds, hc, attns


def decoder_forward(params, ids, hidden, cell, enc):
    """Single-step forward matching the PyTorch module's interface.

    For autoregressive decoding, call `precompute_decoder` once per source
    sequence and `decode_steps` with the whole token plan: the fused loop runs
    all steps in one pallas_call with weights resident in VMEM.
    """
    prep = precompute_decoder(params, enc)
    preds, hc, attns = decode_steps(prep, ids.reshape(1, -1), hidden, cell)
    H, V = prep["H"], prep["V"]
    return preds[0, :, :V], hc[..., :H], hc[..., H:], attns[0]


def decoder_reference(params, ids, hidden, cell, enc):
    """Plain-JAX f32 reference mirroring the PyTorch forward pass."""
    L, B, H = hidden.shape
    V, E = params["emb"].shape
    embedded = params["emb"][ids]                                    # (B, E)
    h_top = hidden[-1]
    energy = jnp.tanh(enc @ params["wae"].T
                      + (h_top @ params["wah"].T + params["battn"])[:, None, :])
    scores = energy @ params["v"]                                    # (B, S)
    attn = jax.nn.softmax(scores, axis=1)
    attn_applied = jnp.einsum("bs,bsh->bh", attn, enc)
    x = jnp.concatenate([embedded, attn_applied], axis=1)
    new_h, new_c = [], []
    for l, (wih, whh, b_ih, b_hh) in enumerate(params["lstm"]):
        gates = x @ wih.T + hidden[l] @ whh.T + b_ih + b_hh
        i, f, g, o = jnp.split(gates, 4, axis=1)
        c = jax.nn.sigmoid(f) * cell[l] + jax.nn.sigmoid(i) * jnp.tanh(g)
        h = jax.nn.sigmoid(o) * jnp.tanh(c)
        new_h.append(h)
        new_c.append(c)
        x = h
    feat = jnp.concatenate([x, attn_applied], axis=1)
    pred = feat @ params["wfc"].T + params["bfc"]
    return pred, jnp.stack(new_h), jnp.stack(new_c), attn


if __name__ == "__main__":
    # Small shapes consistent with the module's forward pass.
    V, E, H, L = 40, 16, 32, 2        # output_dim, emb_dim, hid_dim, n_layers
    B, S, T = 2, 8, 6                 # batch, source length, fused decode steps

    root = jax.random.PRNGKey(0)
    k_ids, k_h, k_c, k_enc, k_par, k_plan = jax.random.split(root, 6)

    ids = jax.random.randint(k_ids, (B,), 0, V, dtype=jnp.int32)
    hidden = 0.1 * jax.random.normal(k_h, (L, B, H), jnp.float32)
    cell = 0.1 * jax.random.normal(k_c, (L, B, H), jnp.float32)
    enc = 0.1 * jax.random.normal(k_enc, (B, S, H), jnp.float32)
    params = init_params(k_par, V, E, H, L)

    # --- 1) Single decoder step (module-faithful interface) -------------------
    out = jax.block_until_ready(decoder_forward(params, ids, hidden, cell, enc))
    ref = decoder_reference(params, ids, hidden, cell, enc)
    for got, want in zip(out, ref):
        assert got.shape == want.shape and got.dtype == want.dtype
        assert jnp.allclose(got, want, atol=5e-3, rtol=5e-3)

    # --- 2) Fused multi-step decode: one pallas_call, weights VMEM-resident ---
    plan = jax.random.randint(k_plan, (T, B), 0, V, dtype=jnp.int32)
    prep = precompute_decoder(params, enc)
    preds, hc, attns = jax.block_until_ready(decode_steps(prep, plan, hidden, cell))

    h_ref, c_ref = hidden, cell
    for t in range(T):
        p_t, h_ref, c_ref, a_t = decoder_reference(params, plan[t], h_ref, c_ref, enc)
        assert jnp.allclose(preds[t, :, :V], p_t, atol=5e-3, rtol=5e-3)
        assert jnp.allclose(attns[t], a_t, atol=5e-3, rtol=5e-3)
    assert jnp.allclose(hc[..., :H], h_ref, atol=5e-3, rtol=5e-3)
    assert jnp.allclose(hc[..., H:], c_ref, atol=5e-3, rtol=5e-3)

    print("KERNEL_OK")
</pallas_src>

<mosaic_0001>
module attributes {stable_mosaic.version = 11 : i64} {
  func.func @_decoder_kernel(%arg0: i32, %arg1: memref<1x2xi32, #tpu.memory_space<smem>>, %arg2: memref<2x2x64xf32, #tpu.memory_space<vmem>>, %arg3: memref<16x32xf32, #tpu.memory_space<vmem>>, %arg4: memref<16x32xf32, #tpu.memory_space<vmem>>, %arg5: memref<16x2xf32, #tpu.memory_space<vmem>>, %arg6: memref<2x16xf32, #tpu.memory_space<vmem>>, %arg7: memref<40x128xf32, #tpu.memory_space<vmem>>, %arg8: memref<33x32xf32, #tpu.memory_space<vmem>>, %arg9: memref<2x64x128xf32, #tpu.memory_space<vmem>>, %arg10: memref<2x128xf32, #tpu.memory_space<vmem>>, %arg11: memref<64x128xf32, #tpu.memory_space<vmem>>, %arg12: memref<1x128xf32, #tpu.memory_space<vmem>>, %arg13: memref<1x2x128xf32, #tpu.memory_space<vmem>>, %arg14: memref<2x2x64xf32, #tpu.memory_space<vmem>>, %arg15: memref<1x2x8xf32, #tpu.memory_space<vmem>>, %arg16: memref<2x2x64xf32, #tpu.memory_space<vmem>>, %arg17: memref<2x128xf32, #tpu.memory_space<vmem>>) attributes {dimension_semantics = [#tpu.dimension_semantics<arbitrary>], iteration_bounds = array<i64: 1>, scalar_prefetch = 1 : i64, scratch_operands = 2 : i64, tpu.core_type = #tpu.core_type<tc>, window_params = [{pipeline_mode = #tpu.pipeline_mode<synchronous>, transform_indices = @transform_0, window_bounds = array<i64: 2, 2, 64>}, {pipeline_mode = #tpu.pipeline_mode<synchronous>, transform_indices = @transform_1, window_bounds = array<i64: 16, 32>}, {pipeline_mode = #tpu.pipeline_mode<synchronous>, transform_indices = @transform_2, window_bounds = array<i64: 16, 32>}, {pipeline_mode = #tpu.pipeline_mode<synchronous>, transform_indices = @transform_3, window_bounds = array<i64: 16, 2>}, {pipeline_mode = #tpu.pipeline_mode<synchronous>, transform_indices = @transform_4, window_bounds = array<i64: 2, 16>}, {pipeline_mode = #tpu.pipeline_mode<synchronous>, transform_indices = @transform_5, window_bounds = array<i64: 40, 128>}, {pipeline_mode = #tpu.pipeline_mode<synchronous>, transform_indices = @transform_6, window_bounds = array<i64: 33, 32>}, {pipeline_mode = #tpu.pipeline_mode<synchronous>, transform_indices = @transform_7, window_bounds = array<i64: 2, 64, 128>}, {pipeline_mode = #tpu.pipeline_mode<synchronous>, transform_indices = @transform_8, window_bounds = array<i64: 2, 128>}, {pipeline_mode = #tpu.pipeline_mode<synchronous>, transform_indices = @transform_9, window_bounds = array<i64: 64, 128>}, {pipeline_mode = #tpu.pipeline_mode<synchronous>, transform_indices = @transform_10, window_bounds = array<i64: 1, 128>}, {transform_indices = @transform_11, window_bounds = array<i64: 1, 2, 128>}, {pipeline_mode = #tpu.pipeline_mode<synchronous>, transform_indices = @transform_12, window_bounds = array<i64: 2, 2, 64>}, {transform_indices = @transform_13, window_bounds = array<i64: 1, 2, 8>}]} {
    %c0_i32 = arith.constant 0 : i32
    %0 = arith.cmpi eq, %arg0, %c0_i32 : i32
    %1 = arith.extui %0 : i1 to i32
    %c0_i32_0 = arith.constant 0 : i32
    %2 = arith.cmpi ne, %1, %c0_i32_0 : i32
    scf.if %2 {
      %c0_71 = arith.constant 0 : index
      %c0_72 = arith.constant 0 : index
      %c0_73 = arith.constant 0 : index
      %127 = vector.load %arg2[%c0_71, %c0_72, %c0_73] : memref<2x2x64xf32, #tpu.memory_space<vmem>>, vector<2x2x64xf32>
      %c0_74 = arith.constant 0 : index
      %c0_75 = arith.constant 0 : index
      %c0_76 = arith.constant 0 : index
      %128 = vector.load %arg16[%c0_74, %c0_75, %c0_76] : memref<2x2x64xf32, #tpu.memory_space<vmem>>, vector<2x2x64xf32>
      tpu.vector_store %arg16[%c0_74, %c0_75, %c0_76], %127 {strides = array<i32>} : memref<2x2x64xf32, #tpu.memory_space<vmem>>, vector<2x2x64xf32>,
    } else {
    }
    %3 = arith.index_cast %arg0 : i32 to index
    %c0 = arith.constant 0 : index
    %4 = memref.load %arg1[%3, %c0] : memref<1x2xi32, #tpu.memory_space<smem>>
    %5 = arith.index_cast %4 : i32 to index
    %c0_1 = arith.constant 0 : index
    %6 = vector.load %arg7[%5, %c0_1] : memref<40x128xf32, #tpu.memory_space<vmem>>, vector<1x128xf32>
    %c0_2 = arith.constant 0 : index
    %c0_3 = arith.constant 0 : index
    %7 = vector.load %arg17[%c0_2, %c0_3] : memref<2x128xf32, #tpu.memory_space<vmem>>, vector<1x128xf32>
    tpu.vector_store %arg17[%c0_2, %c0_3], %6 {strides = array<i32>} : memref<2x128xf32, #tpu.memory_space<vmem>>, vector<1x128xf32>,
    %8 = arith.index_cast %arg0 : i32 to index
    %c1 = arith.constant 1 : index
    %9 = memref.load %arg1[%8, %c1] : memref<1x2xi32, #tpu.memory_space<smem>>
    %10 = arith.index_cast %9 : i32 to index
    %c0_4 = arith.constant 0 : index
    %11 = vector.load %arg7[%10, %c0_4] : memref<40x128xf32, #tpu.memory_space<vmem>>, vector<1x128xf32>
    %c1_5 = arith.constant 1 : index
    %c0_6 = arith.constant 0 : index
    %12 = vector.load %arg17[%c1_5, %c0_6] : memref<2x128xf32, #tpu.memory_space<vmem>>, vector<1x128xf32>
    tpu.vector_store %arg17[%c1_5, %c0_6], %11 {strides = array<i32>} : memref<2x128xf32, #tpu.memory_space<vmem>>, vector<1x128xf32>,
    %c0_7 = arith.constant 0 : index
    %c0_8 = arith.constant 0 : index
    %13 = vector.load %arg17[%c0_7, %c0_8] : memref<2x128xf32, #tpu.memory_space<vmem>>, vector<2x128xf32>
    %c1_9 = arith.constant 1 : index
    %c0_10 = arith.constant 0 : index
    %c0_11 = arith.constant 0 : index
    %14 = vector.load %arg16[%c1_9, %c0_10, %c0_11] : memref<2x2x64xf32, #tpu.memory_space<vmem>>, vector<1x2x64xf32>
    %15 = vector.shape_cast %14 : vector<1x2x64xf32> to vector<2x64xf32>
    %16 = vector.extract_strided_slice %15 {offsets = [0, 0], sizes = [2, 32], strides = [1, 1]} : vector<2x64xf32> to vector<2x32xf32>
    %c0_12 = arith.constant 0 : index
    %c0_13 = arith.constant 0 : index
    %17 = vector.load %arg8[%c0_12, %c0_13] : memref<33x32xf32, #tpu.memory_space<vmem>>, vector<32x32xf32>
    %c32 = arith.constant 32 : index
    %c0_14 = arith.constant 0 : index
    %18 = vector.load %arg8[%c32, %c0_14] : memref<33x32xf32, #tpu.memory_space<vmem>>, vector<1x32xf32>
    %cst = arith.constant dense<0.000000e+00> : vector<2x32xf32>
    %19 = tpu.matmul %16, %17, %cst {dimension_numbers = #tpu.dot_dimension_numbers<[1], [0], [0], [1], [0, 0, 1, 1], [], []>} : vector<2x32xf32>, vector<32x32xf32>, vector<2x32xf32> -> vector<2x32xf32>
    %c0_15 = arith.constant 0 : index
    %c0_16 = arith.constant 0 : index
    %20 = vector.load %arg5[%c0_15, %c0_16] : memref<16x2xf32, #tpu.memory_space<vmem>>, vector<16x2xf32>
    %cst_17 = arith.constant dense<0.000000e+00> : vector<16x32xf32>
    %21 = tpu.matmul %20, %19, %cst_17 {dimension_numbers = #tpu.dot_dimension_numbers<[1], [0], [0], [1], [0, 0, 1, 1], [], []>} : vector<16x2xf32>, vector<2x32xf32>, vector<16x32xf32> -> vector<16x32xf32>
    %c0_18 = arith.constant 0 : index
    %c0_19 = arith.constant 0 : index
    %22 = vector.load %arg3[%c0_18, %c0_19] : memref<16x32xf32, #tpu.memory_space<vmem>>, vector<16x32xf32>
    %23 = arith.addf %22, %21 : vector<16x32xf32>
    %24 = math.tanh %23 : vector<16x32xf32>
    %25 = vector.broadcast %18 : vector<1x32xf32> to vector<16x32xf32>
    %26 = arith.mulf %24, %25 : vector<16x32xf32>
    %cst_20 = arith.constant dense<0.000000e+00> : vector<16xf32>
    %27 = vector.multi_reduction <add>, %26, %cst_20 [1] : vector<16x32xf32> to vector<16xf32>
    %28 = vector.shape_cast %27 : vector<16xf32> to vector<16x1xf32>
    %29 = vector.shape_cast %28 : vector<16x1xf32> to vector<2x8xf32>
    %cst_21 = arith.constant dense<0xFF800000> : vector<2xf32>
    %30 = vector.multi_reduction <maximumf>, %29, %cst_21 [1] : vector<2x8xf32> to vector<2xf32>
    %31 = vector.shape_cast %30 : vector<2xf32> to vector<2x1xf32>
    %32 = vector.broadcast %31 : vector<2x1xf32> to vector<2x8xf32>
    %33 = arith.subf %29, %32 : vector<2x8xf32>
    %34 = math.exp %33 : vector<2x8xf32>
    %cst_22 = arith.constant dense<0.000000e+00> : vector<2xf32>
    %35 = vector.multi_reduction <add>, %34, %cst_22 [1] : vector<2x8xf32> to vector<2xf32>
    %36 = vector.shape_cast %35 : vector<2xf32> to vector<2x1xf32>
    %37 = vector.broadcast %36 : vector<2x1xf32> to vector<2x8xf32>
    %38 = arith.divf %34, %37 : vector<2x8xf32>
    %c0_23 = arith.constant 0 : index
    %c0_24 = arith.constant 0 : index
    %c0_25 = arith.constant 0 : index
    %39 = vector.load %arg15[%c0_23, %c0_24, %c0_25] : memref<1x2x8xf32, #tpu.memory_space<vmem>>, vector<1x2x8xf32>
    %40 = vector.shape_cast %39 : vector<1x2x8xf32> to vector<2x8xf32>
    %41 = vector.shape_cast %38 : vector<2x8xf32> to vector<1x2x8xf32>
    tpu.vector_store %arg15[%c0_23, %c0_24, %c0_25], %41 {strides = array<i32>} : memref<1x2x8xf32, #tpu.memory_space<vmem>>, vector<1x2x8xf32>,
    %42 = tpu.concatenate %38, %38 in 1 : vector<2x8xf32>, vector<2x8xf32> -> vector<2x16xf32>
    %c0_26 = arith.constant 0 : index
    %c0_27 = arith.constant 0 : index
    %43 = vector.load %arg6[%c0_26, %c0_27] : memref<2x16xf32, #tpu.memory_space<vmem>>, vector<2x16xf32>
    %44 = arith.mulf %42, %43 : vector<2x16xf32>
    %c0_28 = arith.constant 0 : index
    %c0_29 = arith.constant 0 : index
    %45 = vector.load %arg4[%c0_28, %c0_29] : memref<16x32xf32, #tpu.memory_space<vmem>>, vector<16x32xf32>
    %cst_30 = arith.constant dense<0.000000e+00> : vector<2x32xf32>
    %46 = tpu.matmul %44, %45, %cst_30 {dimension_numbers = #tpu.dot_dimension_numbers<[1], [0], [0], [1], [0, 0, 1, 1], [], []>} : vector<2x16xf32>, vector<16x32xf32>, vector<2x32xf32> -> vector<2x32xf32>
    %47 = tpu.iota {dimensions = array<i32: 1>} : vector<2x128xi32>
    %c64_i32 = arith.constant 64 : i32
    %48 = vector.broadcast %c64_i32 : i32 to vector<2x128xi32>
    %49 = arith.cmpi sge, %47, %48 : vector<2x128xi32>
    %c96_i32 = arith.constant 96 : i32
    %50 = vector.broadcast %c96_i32 : i32 to vector<2x128xi32>
    %51 = arith.cmpi slt, %47, %50 : vector<2x128xi32>
    %52 = arith.andi %49, %51 : vector<2x128xi1>
    %c0_31 = arith.constant 0 : index
    %c0_32 = arith.constant 0 : index
    %c0_33 = arith.constant 0 : index
    %53 = vector.load %arg16[%c0_31, %c0_32, %c0_33] : memref<2x2x64xf32, #tpu.memory_space<vmem>>, vector<1x2x64xf32>
    %54 = vector.shape_cast %53 : vector<1x2x64xf32> to vector<2x64xf32>
    %55 = vector.extract_strided_slice %54 {offsets = [0, 0], sizes = [2, 32], strides = [1, 1]} : vector<2x64xf32> to vector<2x32xf32>
    %56 = vector.extract_strided_slice %54 {offsets = [0, 32], sizes = [2, 32], strides = [1, 1]} : vector<2x64xf32> to vector<2x32xf32>
    %57 = tpu.concatenate %46, %55 in 1 : vector<2x32xf32>, vector<2x32xf32> -> vector<2x64xf32>
    %c0_34 = arith.constant 0 : index
    %c0_35 = arith.constant 0 : index
    %c0_36 = arith.constant 0 : index
    %58 = vector.load %arg9[%c0_34, %c0_35, %c0_36] : memref<2x64x128xf32, #tpu.memory_space<vmem>>, vector<1x64x128xf32>
    %59 = vector.shape_cast %58 : vector<1x64x128xf32> to vector<64x128xf32>
    %cst_37 = arith.constant dense<0.000000e+00> : vector<2x128xf32>
    %60 = tpu.matmul %57, %59, %cst_37 {dimension_numbers = #tpu.dot_dimension_numbers<[1], [0], [0], [1], [0, 0, 1, 1], [], []>} : vector<2x64xf32>, vector<64x128xf32>, vector<2x128xf32> -> vector<2x128xf32>
    %c0_38 = arith.constant 0 : index
    %c0_39 = arith.constant 0 : index
    %61 = vector.load %arg10[%c0_38, %c0_39] : memref<2x128xf32, #tpu.memory_space<vmem>>, vector<1x128xf32>
    %62 = vector.broadcast %61 : vector<1x128xf32> to vector<2x128xf32>
    %63 = arith.addf %60, %62 : vector<2x128xf32>
    %64 = arith.addf %63, %13 : vector<2x128xf32>
    %65 = arith.negf %64 : vector<2x128xf32>
    %66 = math.exp %65 : vector<2x128xf32>
    %cst_40 = arith.constant 1.000000e+00 : f32
    %67 = vector.broadcast %cst_40 : f32 to vector<2x128xf32>
    %68 = arith.addf %67, %66 : vector<2x128xf32>
    %69 = arith.divf %67, %68 : vector<2x128xf32>
    %70 = math.tanh %64 : vector<2x128xf32>
    %71 = arith.select %52, %70, %69 : vector<2x128xi1>, vector<2x128xf32>
    %72 = vector.extract_strided_slice %71 {offsets = [0, 0], sizes = [2, 32], strides = [1, 1]} : vector<2x128xf32> to vector<2x32xf32>
    %73 = vector.extract_strided_slice %71 {offsets = [0, 32], sizes = [2, 32], strides = [1, 1]} : vector<2x128xf32> to vector<2x32xf32>
    %74 = vector.extract_strided_slice %71 {offsets = [0, 64], sizes = [2, 32], strides = [1, 1]} : vector<2x128xf32> to vector<2x32xf32>
    %75 = vector.extract_strided_slice %71 {offsets = [0, 96], sizes = [2, 32], strides = [1, 1]} : vector<2x128xf32> to vector<2x32xf32>
    %76 = arith.mulf %73, %56 : vector<2x32xf32>
    %77 = arith.mulf %72, %74 : vector<2x32xf32>
    %78 = arith.addf %76, %77 : vector<2x32xf32>
    %79 = math.tanh %78 : vector<2x32xf32>
    %80 = arith.mulf %75, %79 : vector<2x32xf32>
    %81 = tpu.concatenate %80, %78 in 1 : vector<2x32xf32>, vector<2x32xf32> -> vector<2x64xf32>
    %c0_41 = arith.constant 0 : index
    %c0_42 = arith.constant 0 : index
    %c0_43 = arith.constant 0 : index
    %82 = vector.load %arg16[%c0_41, %c0_42, %c0_43] : memref<2x2x64xf32, #tpu.memory_space<vmem>>, vector<1x2x64xf32>
    %83 = vector.shape_cast %82 : vector<1x2x64xf32> to vector<2x64xf32>
    %84 = vector.shape_cast %81 : vector<2x64xf32> to vector<1x2x64xf32>
    tpu.vector_store %arg16[%c0_41, %c0_42, %c0_43], %84 {strides = array<i32>} : memref<2x2x64xf32, #tpu.memory_space<vmem>>, vector<1x2x64xf32>,
    %c1_44 = arith.constant 1 : index
    %c0_45 = arith.constant 0 : index
    %c0_46 = arith.constant 0 : index
    %85 = vector.load %arg16[%c1_44, %c0_45, %c0_46] : memref<2x2x64xf32, #tpu.memory_space<vmem>>, vector<1x2x64xf32>
    %86 = vector.shape_cast %85 : vector<1x2x64xf32> to vector<2x64xf32>
    %87 = vector.extract_strided_slice %86 {offsets = [0, 0], sizes = [2, 32], strides = [1, 1]} : vector<2x64xf32> to vector<2x32xf32>
    %88 = vector.extract_strided_slice %86 {offsets = [0, 32], sizes = [2, 32], strides = [1, 1]} : vector<2x64xf32> to vector<2x32xf32>
    %89 = tpu.concatenate %80, %87 in 1 : vector<2x32xf32>, vector<2x32xf32> -> vector<2x64xf32>
    %c1_47 = arith.constant 1 : index
    %c0_48 = arith.constant 0 : index
    %c0_49 = arith.constant 0 : index
    %90 = vector.load %arg9[%c1_47, %c0_48, %c0_49] : memref<2x64x128xf32, #tpu.memory_space<vmem>>, vector<1x64x128xf32>
    %91 = vector.shape_cast %90 : vector<1x64x128xf32> to vector<64x128xf32>
    %cst_50 = arith.constant dense<0.000000e+00> : vector<2x128xf32>
    %92 = tpu.matmul %89, %91, %cst_50 {dimension_numbers = #tpu.dot_dimension_numbers<[1], [0], [0], [1], [0, 0, 1, 1], [], []>} : vector<2x64xf32>, vector<64x128xf32>, vector<2x128xf32> -> vector<2x128xf32>
    %c1_51 = arith.constant 1 : index
    %c0_52 = arith.constant 0 : index
    %93 = vector.load %arg10[%c1_51, %c0_52] : memref<2x128xf32, #tpu.memory_space<vmem>>, vector<1x128xf32>
    %94 = vector.broadcast %93 : vector<1x128xf32> to vector<2x128xf32>
    %95 = arith.addf %92, %94 : vector<2x128xf32>
    %96 = arith.negf %95 : vector<2x128xf32>
    %97 = math.exp %96 : vector<2x128xf32>
    %cst_53 = arith.constant 1.000000e+00 : f32
    %98 = vector.broadcast %cst_53 : f32 to vector<2x128xf32>
    %99 = arith.addf %98, %97 : vector<2x128xf32>
    %100 = arith.divf %98, %99 : vector<2x128xf32>
    %101 = math.tanh %95 : vector<2x128xf32>
    %102 = arith.select %52, %101, %100 : vector<2x128xi1>, vector<2x128xf32>
    %103 = vector.extract_strided_slice %102 {offsets = [0, 0], sizes = [2, 32], strides = [1, 1]} : vector<2x128xf32> to vector<2x32xf32>
    %104 = vector.extract_strided_slice %102 {offsets = [0, 32], sizes = [2, 32], strides = [1, 1]} : vector<2x128xf32> to vector<2x32xf32>
    %105 = vector.extract_strided_slice %102 {offsets = [0, 64], sizes = [2, 32], strides = [1, 1]} : vector<2x128xf32> to vector<2x32xf32>
    %106 = vector.extract_strided_slice %102 {offsets = [0, 96], sizes = [2, 32], strides = [1, 1]} : vector<2x128xf32> to vector<2x32xf32>
    %107 = arith.mulf %104, %88 : vector<2x32xf32>
    %108 = arith.mulf %103, %105 : vector<2x32xf32>
    %109 = arith.addf %107, %108 : vector<2x32xf32>
    %110 = math.tanh %109 : vector<2x32xf32>
    %111 = arith.mulf %106, %110 : vector<2x32xf32>
    %112 = tpu.concatenate %111, %109 in 1 : vector<2x32xf32>, vector<2x32xf32> -> vector<2x64xf32>
    %c1_54 = arith.constant 1 : index
    %c0_55 = arith.constant 0 : index
    %c0_56 = arith.constant 0 : index
    %113 = vector.load %arg16[%c1_54, %c0_55, %c0_56] : memref<2x2x64xf32, #tpu.memory_space<vmem>>, vector<1x2x64xf32>
    %114 = vector.shape_cast %113 : vector<1x2x64xf32> to vector<2x64xf32>
    %115 = vector.shape_cast %112 : vector<2x64xf32> to vector<1x2x64xf32>
    tpu.vector_store %arg16[%c1_54, %c0_55, %c0_56], %115 {strides = array<i32>} : memref<2x2x64xf32, #tpu.memory_space<vmem>>, vector<1x2x64xf32>,
    %c0_57 = arith.constant 0 : index
    %c0_58 = arith.constant 0 : index
    %c0_59 = arith.constant 0 : index
    %116 = vector.load %arg16[%c0_57, %c0_58, %c0_59] : memref<2x2x64xf32, #tpu.memory_space<vmem>>, vector<2x2x64xf32>
    %c0_60 = arith.constant 0 : index
    %c0_61 = arith.constant 0 : index
    %c0_62 = arith.constant 0 : index
    %117 = vector.load %arg14[%c0_60, %c0_61, %c0_62] : memref<2x2x64xf32, #tpu.memory_space<vmem>>, vector<2x2x64xf32>
    tpu.vector_store %arg14[%c0_60, %c0_61, %c0_62], %116 {strides = array<i32>} : memref<2x2x64xf32, #tpu.memory_space<vmem>>, vector<2x2x64xf32>,
    %118 = tpu.concatenate %111, %46 in 1 : vector<2x32xf32>, vector<2x32xf32> -> vector<2x64xf32>
    %c0_63 = arith.constant 0 : index
    %c0_64 = arith.constant 0 : index
    %119 = vector.load %arg11[%c0_63, %c0_64] : memref<64x128xf32, #tpu.memory_space<vmem>>, vector<64x128xf32>
    %cst_65 = arith.constant dense<0.000000e+00> : vector<2x128xf32>
    %120 = tpu.matmul %118, %119, %cst_65 {dimension_numbers = #tpu.dot_dimension_numbers<[1], [0], [0], [1], [0, 0, 1, 1], [], []>} : vector<2x64xf32>, vector<64x128xf32>, vector<2x128xf32> -> vector<2x128xf32>
    %c0_66 = arith.constant 0 : index
    %c0_67 = arith.constant 0 : index
    %121 = vector.load %arg12[%c0_66, %c0_67] : memref<1x128xf32, #tpu.memory_space<vmem>>, vector<1x128xf32>
    %122 = vector.broadcast %121 : vector<1x128xf32> to vector<2x128xf32>
    %123 = arith.addf %120, %122 : vector<2x128xf32>
    %c0_68 = arith.constant 0 : index
    %c0_69 = arith.constant 0 : index
    %c0_70 = arith.constant 0 : index
    %124 = vector.load %arg13[%c0_68, %c0_69, %c0_70] : memref<1x2x128xf32, #tpu.memory_space<vmem>>, vector<1x2x128xf32>
    %125 = vector.shape_cast %124 : vector<1x2x128xf32> to vector<2x128xf32>
    %126 = vector.shape_cast %123 : vector<2x128xf32> to vector<1x2x128xf32>
    tpu.vector_store %arg13[%c0_68, %c0_69, %c0_70], %126 {strides = array<i32>} : memref<1x2x128xf32, #tpu.memory_space<vmem>>, vector<1x2x128xf32>,
    return
  }
  func.func @transform_0(%arg0: i32, %arg1: memref<1x2xi32, #tpu.memory_space<smem>>) -> (i32, i32, i32) {
    %c0_i32 = arith.constant 0 : i32
    %c0_i32_0 = arith.constant 0 : i32
    %c0_i32_1 = arith.constant 0 : i32
    %c0_i32_2 = arith.constant 0 : i32
    return %c0_i32, %c0_i32_0, %c0_i32_1 : i32, i32, i32
  }
  func.func @transform_1(%arg0: i32, %arg1: memref<1x2xi32, #tpu.memory_space<smem>>) -> (i32, i32) {
    %c0_i32 = arith.constant 0 : i32
    %c0_i32_0 = arith.constant 0 : i32
    %c0_i32_1 = arith.constant 0 : i32
    return %c0_i32, %c0_i32_0 : i32, i32
  }
  func.func @transform_2(%arg0: i32, %arg1: memref<1x2xi32, #tpu.memory_space<smem>>) -> (i32, i32) {
    %c0_i32 = arith.constant 0 : i32
    %c0_i32_0 = arith.constant 0 : i32
    %c0_i32_1 = arith.constant 0 : i32
    return %c0_i32, %c0_i32_0 : i32, i32
  }
  func.func @transform_3(%arg0: i32, %arg1: memref<1x2xi32, #tpu.memory_space<smem>>) -> (i32, i32) {
    %c0_i32 = arith.constant 0 : i32
    %c0_i32_0 = arith.constant 0 : i32
    %c0_i32_1 = arith.constant 0 : i32
    return %c0_i32, %c0_i32_0 : i32, i32
  }
  func.func @transform_4(%arg0: i32, %arg1: memref<1x2xi32, #tpu.memory_space<smem>>) -> (i32, i32) {
    %c0_i32 = arith.constant 0 : i32
    %c0_i32_0 = arith.constant 0 : i32
    %c0_i32_1 = arith.constant 0 : i32
    return %c0_i32, %c0_i32_0 : i32, i32
  }
  func.func @transform_5(%arg0: i32, %arg1: memref<1x2xi32, #tpu.memory_space<smem>>) -> (i32, i32) {
    %c0_i32 = arith.constant 0 : i32
    %c0_i32_0 = arith.constant 0 : i32
    %c0_i32_1 = arith.constant 0 : i32
    return %c0_i32, %c0_i32_0 : i32, i32
  }
  func.func @transform_6(%arg0: i32, %arg1: memref<1x2xi32, #tpu.memory_space<smem>>) -> (i32, i32) {
    %c0_i32 = arith.constant 0 : i32
    %c0_i32_0 = arith.constant 0 : i32
    %c0_i32_1 = arith.constant 0 : i32
    return %c0_i32, %c0_i32_0 : i32, i32
  }
  func.func @transform_7(%arg0: i32, %arg1: memref<1x2xi32, #tpu.memory_space<smem>>) -> (i32, i32, i32) {
    %c0_i32 = arith.constant 0 : i32
    %c0_i32_0 = arith.constant 0 : i32
    %c0_i32_1 = arith.constant 0 : i32
    %c0_i32_2 = arith.constant 0 : i32
    return %c0_i32, %c0_i32_0, %c0_i32_1 : i32, i32, i32
  }
  func.func @transform_8(%arg0: i32, %arg1: memref<1x2xi32, #tpu.memory_space<smem>>) -> (i32, i32) {
    %c0_i32 = arith.constant 0 : i32
    %c0_i32_0 = arith.constant 0 : i32
    %c0_i32_1 = arith.constant 0 : i32
    return %c0_i32, %c0_i32_0 : i32, i32
  }
  func.func @transform_9(%arg0: i32, %arg1: memref<1x2xi32, #tpu.memory_space<smem>>) -> (i32, i32) {
    %c0_i32 = arith.constant 0 : i32
    %c0_i32_0 = arith.constant 0 : i32
    %c0_i32_1 = arith.constant 0 : i32
    return %c0_i32, %c0_i32_0 : i32, i32
  }
  func.func @transform_10(%arg0: i32, %arg1: memref<1x2xi32, #tpu.memory_space<smem>>) -> (i32, i32) {
    %c0_i32 = arith.constant 0 : i32
    %c0_i32_0 = arith.constant 0 : i32
    %c0_i32_1 = arith.constant 0 : i32
    return %c0_i32, %c0_i32_0 : i32, i32
  }
  func.func @transform_11(%arg0: i32, %arg1: memref<1x2xi32, #tpu.memory_space<smem>>) -> (i32, i32, i32) {
    %c0_i32 = arith.constant 0 : i32
    %c0_i32_0 = arith.constant 0 : i32
    %c0_i32_1 = arith.constant 0 : i32
    return %arg0, %c0_i32, %c0_i32_0 : i32, i32, i32
  }
  func.func @transform_12(%arg0: i32, %arg1: memref<1x2xi32, #tpu.memory_space<smem>>) -> (i32, i32, i32) {
    %c0_i32 = arith.constant 0 : i32
    %c0_i32_0 = arith.constant 0 : i32
    %c0_i32_1 = arith.constant 0 : i32
    %c0_i32_2 = arith.constant 0 : i32
    return %c0_i32, %c0_i32_0, %c0_i32_1 : i32, i32, i32
  }
  func.func @transform_13(%arg0: i32, %arg1: memref<1x2xi32, #tpu.memory_space<smem>>) -> (i32, i32, i32) {
    %c0_i32 = arith.constant 0 : i32
    %c0_i32_0 = arith.constant 0 : i32
    %c0_i32_1 = arith.constant 0 : i32
    return %arg0, %c0_i32, %c0_i32_0 : i32, i32, i32
  }
}

</mosaic_0001>

<bundles_post_ra>
// kernel: tpu_custom_call.1
= control target key start
LH: loop header
LB: loop body
LE: loop exit
PB: predicated region body
PF: predicated region fallthrough
CT: control target
= control target key end

     0   :  { %s1594_s0 = inlined_call_operand.vmem [shape: s32[1,2], index: 0, kind: input, shape index: {}]   ;;  %s1595_s1 = inlined_call_operand.vmem [shape: f32[2,2,64], index: 1, kind: input, shape index: {}]   ;;  %s1596_s2 = inlined_call_operand.vmem [shape: f32[16,32], index: 2, kind: input, shape index: {}]   ;;  %s1597_s3 = inlined_call_operand.hbm [shape: f32[16,32], index: 3, kind: input, shape index: {}]   ;;  %s1598_s4 = inlined_call_operand.vmem [shape: f32[16,2], index: 4, kind: input, shape index: {}]   ;;  %s1599_s5 = inlined_call_operand.vmem [shape: f32[2,16], index: 5, kind: input, shape index: {}]   ;;  %s1600_s6 = inlined_call_operand.vmem [shape: f32[40,128], index: 6, kind: input, shape index: {}]   ;;  %s1601_s7 = inlined_call_operand.vmem [shape: f32[33,32], index: 7, kind: input, shape index: {}]   ;;  %s1602_s8 = inlined_call_operand.hbm [shape: f32[2,64,128], index: 8, kind: input, shape index: {}]   ;;  %s1603_s9 = inlined_call_operand.hbm [shape: f32[2,128], index: 9, kind: input, shape index: {}]   ;;  %s1604_s10 = inlined_call_operand.vmem [shape: f32[64,128], index: 10, kind: input, shape index: {}]   ;;  %s1605_s11 = inlined_call_operand.vmem [shape: f32[1,128], index: 11, kind: input, shape index: {}]   ;;  %s1606_s12 = inlined_call_operand.hbm [shape: f32[1,2,128], index: 12, kind: output, shape index: {0}]   ;;  %s1607_s13 = inlined_call_operand.hbm [shape: f32[2,2,64], index: 13, kind: output, shape index: {1}]   ;;  %s1608_s14 = inlined_call_operand.hbm [shape: f32[1,2,8], index: 14, kind: output, shape index: {2}]  }
   0x1   :  { %s20_s15 = sshll.u32 %s1594_s0, 4  ;;  %s21_s15 = int_to_ptr.vmem [resolvable:$true] %s20_s15 }
   0x2   :  { %s1100_s16 = scalar_lea.vmem %s21_s15, 16  ;;  %p1105_p1 = scmp.lt.s32.totalorder %s21_s15, %s21_s15 }
   0x3   :  { %p1101_p0 = scmp.ne.s32.totalorder %s21_s15, %s1100_s16  ;;  %p1106_p2 = scmp.lt.s32.totalorder %s1100_s16, %s1100_s16 }
   0x5   :  { %p1107_p3 = por %p1106_p2, %p1105_p1 }
   0x7   :  { %p1108_p4 = pnand %p1107_p3, %p1101_p0 }
   0x9   :  { %1111 = shalt.err (!%p1108_p4)  }
   0xa   :  { %s1254_s17 = smov [#allocation5]  }
   0xb   :  { %23 = dma.vmem_to_smem %s21_s15, 16, %s1254_s17, [#allocation4] }
   0xc   :  { %1244 = dma.done.wait [#allocation4], 16 }
   0xd   :  { %1245 = vsyncadd [#allocation4], 4294967280 }
   0xe   :  { %25 = sfence }
   0xf   :  { %26 = vsyncpa [#allocation7], 0 }
  0x10   :  { %27 = vsyncpa [#allocation10], 0 }
  0x11   :  { %28 = vsyncpa [#allocation8], 0 }
  0x12   :  { %29 = vsyncpa [#allocation14], 0  ;;  %s1255_s18 = smov [#allocation9]   ;;  %s1256_s0 = smov [#allocation6]  }
  0x13   :  { %s59_s19 = sshll.u32 %s1255_s18, 4  ;;  %s39_s20 = sshll.u32 %s1256_s0, 4  ;;  %s60_s19 = int_to_ptr.vmem [resolvable:$true] %s59_s19  ;;  %s1348_s20 = int_to_ptr.vmem [resolvable:$true] %s39_s20 }
  0x14   :  { %s1112_s23 = scalar_lea.hbm %s1602_s8, 2048 }
  0x15   :  { %p1113_p5 = scmp.ne.s32.totalorder %s1602_s8, %s1112_s23  ;;  %p1116_p6 = scmp.lt.u32.totalorder %s1112_s23, %s1602_s8 }
  0x17   :  { %p1118_p7 = pnand %p1116_p6, %p1113_p5 }
  0x19   :  { %1121 = shalt.err (!%p1118_p7)
}
  0x1a   :  { %s1122_s28 = scalar_lea.vmem %s60_s19, 2048  ;;  %p1127_p9 = scmp.lt.s32.totalorder %s60_s19, %s60_s19 }
  0x1b   :  { %p1123_p8 = scmp.ne.s32.totalorder %s60_s19, %s1122_s28  ;;  %p1128_p10 = scmp.lt.s32.totalorder %s1122_s28, %s1122_s28 }
  0x1d   :  { %p1129_p11 = por %p1128_p10, %p1127_p9 }
  0x1f   :  { %p1130_p12 = pnand %p1129_p11, %p1123_p8 }
  0x21   :  { %1133 = shalt.err (!%p1130_p12)
}
  0x22   :  { %s1257_s29 = smov 128   ;;  %s1258_s30 = smov 8  }
  0x23   :  { %65 = dma.hbm_to_vmem [thread:$0]  %s1602_s8, 2048, %s60_s19, [#allocation10], %s1257_s29, %s1257_s29, %s1258_s30  }
  0x24   :  { %s1134_s0 = scalar_lea.hbm %s1597_s3, 256 }
  0x25   :  { %p1135_p13 = scmp.ne.s32.totalorder %s1597_s3, %s1134_s0  ;;  %p1138_p0 = scmp.lt.u32.totalorder %s1134_s0, %s1597_s3 }
  0x27   :  { %p1140_p1 = pnand %p1138_p0, %p1135_p13 }
  0x29   :  { %1143 = shalt.err (!%p1140_p1)
}
  0x2a   :  { %s1144_s25 = scalar_lea.vmem %s1348_s20, 256  ;;  %p1149_p3 = scmp.lt.s32.totalorder %s1348_s20, %s1348_s20 }
  0x2b   :  { %p1145_p2 = scmp.ne.s32.totalorder %s1348_s20, %s1144_s25  ;;  %p1150_p4 = scmp.lt.s32.totalorder %s1144_s25, %s1144_s25 }
  0x2d   :  { %p1151_p5 = por %p1150_p4, %p1149_p3 }
  0x2f   :  { %p1152_p6 = pnand %p1151_p5, %p1145_p2 }
  0x31   :  { %1155 = shalt.err (!%p1152_p6)
}
  0x32   :  { %45 = dma.hbm_to_vmem [thread:$0]  %s1597_s3, 256, %s1348_s20, [#allocation7], %s1257_s29, %s1257_s29, %s1258_s30  }
  0x33   :  { %s1259_s26 = smov [#allocation11]   ;;  %s1156_s16 = scalar_lea.hbm %s1603_s9, 32 }
  0x34   :  { %s72_s27 = sshll.u32 %s1259_s26, 4  ;;  %p1157_p7 = scmp.ne.s32.totalorder %s1603_s9, %s1156_s16  ;;  %s73_s27 = int_to_ptr.vmem [resolvable:$true] %s72_s27 }
  0x35   :  { %p1160_p8 = scmp.lt.u32.totalorder %s1156_s16, %s1603_s9 }
  0x37   :  { %p1162_p9 = pnand %p1160_p8, %p1157_p7 }
  0x39   :  { %1165 = shalt.err (!%p1162_p9)
}
  0x3a   :  { %s1166_s22 = scalar_lea.vmem %s73_s27, 32  ;;  %p1171_p11 = scmp.lt.s32.totalorder %s73_s27, %s73_s27 }
  0x3b   :  { %p1167_p10 = scmp.ne.s32.totalorder %s73_s27, %s1166_s22  ;;  %p1172_p12 = scmp.lt.s32.totalorder %s1166_s22, %s1166_s22 }
  0x3d   :  { %p1173_p13 = por %p1172_p12, %p1171_p11 }
  0x3f   :  { %p1174_p0 = pnand %p1173_p13, %p1167_p10 }
  0x41   :  { %1177 = shalt.err (!%p1174_p0)
}
  0x42   :  { %75 = dma.hbm_to_vmem [thread:$0]  %s1603_s9, 32, %s73_s27, [#allocation10]  }
  0x43   :  { %1246 = dma.done.wait [#allocation7], 256  }
  0x44   :  { %1247 = vsyncadd [#allocation7], 4294967040 }
  0x45   :  { %1248 = dma.done.wait [#allocation10], 2080  }
  0x46   :  { %1249 = vsyncadd [#allocation10], 4294965216  ;;  %v1260_v0 = vmov 0.0|0.0   ;;  %vm1261_vm0 = vmmov 0   ;;  %v1262_v1 = vmov 0.0   ;;  %vm95_vm1 = vcmask 517120  }
  0x47   :  { %1009 = vmatprep.subr.bf16.mxu0 %v1260_v0  ;;  %937 = vmatprep.mubr.msk.f32.mxu0 %vm1261_vm0, %v1262_v1  ;;  %v111_v2 = vld [vmem:[%s1601_s7] sm:$0xff]  ;;  %v112_v3 = vld [vmem:[%s1601_s7 + $0x8] sm:$0xff]  ;;  %v113_v4 = vld [vmem:[%s1601_s7 + $0x10] sm:$0xff]  ;;  %vm116_vm2 = vcmask 261120   ;;  %vm192_vm3 = vcmask 15360   ;;  %vm199_vm4 = vcmask 1041408   ;;  %v298_v27 = vlaneseq }
  0x48   :  { %1018 = vmatprep.subr.bf16.mxu1 %v1260_v0  ;;  %968 = vmatprep.mubr.msk.f32.mxu1 %vm1261_vm0, %v1262_v1  ;;  %v1010_v5 = vpack.c.bf16 %v112_v3, %v111_v2  ;;  %v114_v6 = vld [vmem:[%s1601_s7 + $0x18] sm:$0xff]  ;;  %v94_v7 = vld [vmem:[%s1595_s1 + $0x2] sm:$0x3]  ;;  %v191_v12 = vld [vmem:[%s1598_s4 + $0x8] sm:$0xff]  ;;  %vm308_vm5 = vcmask 1041409   ;;  %vm311_vm6 = vcmask 58368  }
  0x49   :  { %97 = vst.msk [vmem:[#allocation2 + $0x2] sm:$0x3] %vm95_vm1, %v94_v7  ;;  %v1013_v8 = vpack.c.bf16 %v114_v6, %v113_v4  ;;  %v190_v10 = vld [vmem:[%s1598_s4] sm:$0xff]  ;;  %v279_v14 = vld [vmem:[%s1596_s2 + $0x8] sm:$0xff]  ;;  %v1435_v28 = vand.u32 127, %v298_v27  ;;  %v1437_v29 = vshrl.u32 %v298_v27, 7 }
  0x4a   :  { %1011 = vmatpush3.bf16.msra.mxu0 %v1010_v5  ;;  %v278_v15 = vld [vmem:[%s1596_s2] sm:$0xff]  ;;  %v1263_v37 = vmov 0   ;;  %v403_v63 = vld [vmem:[#allocation6 + $0x8] sm:$0xff]  ;;  %v487_v4 = vld [vmem:[#allocation9] sm:$0xff]  ;;  %vm398_vm7 = vcmask 64512   ;;  %vm404_vm8 = vcmask 130048  }
  0x4b   :  { %1012 = vmatprep.subr.bf16.mxu0 %v1260_v0  ;;  %v881_v20 = vld [vmem:[%s1601_s7 + $0x20] ss:$0 sm:$0xff]  ;;  %v1441_v31 = vsub.s32 %v1435_v28, %v1437_v29  ;;  %1071 = vset.pattern.permute.xlu0 %v1263_v37  ;;  %v318_v38 = vsub.s32 0, %v1437_v29  ;;  %v322_v39 = vsub.s32 1, %v1437_v29  ;;  %v402_v62 = vld [vmem:[#allocation6] sm:$0xff]  ;;  %s99_s9 = sld [smem:[#allocation5]] }
  0x4c   :  { %1070 = vset.pattern.permute.xlu1 %v1263_v37  ;;  %v1016_v2 = vpack.c.bf16 %v403_v63, %v402_v62  ;;  %v93_v3 = vld [vmem:[%s1595_s1] sm:$0x3]  ;;  %v489_v7 = vld [vmem:[#allocation9 + $0x10] sm:$0xff]  ;;  %s1264_s1 = smov 32   ;;  %s876_s30 = sld [smem:[#allocation5 + $0x1]]  ;;  %vm500_vm9 = vcmask 523264  }
  0x4d   :  { %v488_v5 = vld [vmem:[#allocation9 + $0x8] sm:$0xff]  ;;  %96 = vst.msk [vmem:[#allocation2] sm:$0x3] %vm95_vm1, %v93_v3  ;;  %v883_v37 = vld [vmem:[#allocation11] ss:$0 sm:$0xff]  ;;  %vm478_vm10 = vcmp.ge.s32.totalorder %v1435_v28, 64 }
  0x4e   :  { %1014 = vmatpush3.bf16.msra.mxu0 %v1013_v8  ;;  %v1019_v6 = vpack.c.bf16 %v488_v5, %v487_v4  ;;  %v490_v8 = vld [vmem:[#allocation9 + $0x18] sm:$0xff]  ;;  %vm479_vm11 = vcmp.lt.s32.totalorder %v1435_v28, 96  ;;  %v620_v63 = vld [vmem:[#allocation9 + $0x70] sm:$0xff] }
  0x4f   :  { %vm1493_vm12 = vmand %vm478_vm10, %vm479_vm11 }
  0x50   :  { %v110_v9 = vld [vmem:[#allocation2 + $0x2] sm:$0x3]  ;;  %1020 = vmatpush3.bf16.msra.mxu1 %v1019_v6 }
  0x51   :  { %938 = vmatmul.mubr.msk.f32.vlgmr.msra.gmra.mrb[0].mxu0 %vm116_vm2, %v110_v9  ;;  %v1022_v9 = vpack.c.bf16 %v490_v8, %v489_v7  ;;  %1021 = vmatprep.subr.bf16.mxu1 %v1260_v0  ;;  %s100_s25 = scalar_lea.vmem %s1600_s6, %s99_s9 }
  0x52   :  { %942 = vmatprep.mubr.msk.f32.mxu0 %vm192_vm3, %v190_v10  ;;  %v491_v10 = vld [vmem:[#allocation9 + $0x20] sm:$0xff]  ;;  %s105_s19 = scalar_lea.vmem %s1600_s6, %s876_s30  ;;  %s1265_s6 = smov 64  }
  0x54   :  { %1023 = vmatpush3.bf16.msra.mxu1 %v1022_v9 }
  0x55   :  { %1024 = vmatprep.subr.bf16.mxu1 %v1260_v0 }
 0x124   :  { %v186_v11 = vpop.f32.mrb[0].mxu0 }
 0x125   :  { %v939_v13 = vpop.f32.mrb[1].mxu0  ;;  %940 = vmatprep.subr.msk.mxu0 %vm199_vm4, %v186_v11 }
 0x126   :  { %941 = vmatpush3.msk.msra.mxu0 %vm199_vm4, %v186_v11  ;;  %v492_v11 = vld [vmem:[#allocation9 + $0x28] sm:$0xff] }
 0x127   :  { %943 = vmatmul.mubr.msk.f32.vlgmr.msra.gmra.mrb[2].mxu0 %vm192_vm3, %v191_v12  ;;  %1015 = vmatprep.subr.bf16.mxu0 %v1260_v0  ;;  %v1025_v12 = vpack.c.bf16 %v492_v11, %v491_v10  ;;  %v1459_v13 = vld [vmem:[#allocation2] sm:$0x3] }
 0x128   :  { %949 = vmatprep.mubr.msk.f32.mxu0 %vm1261_vm0, %v1262_v1  ;;  %1017 = vmatpush3.bf16.msra.mxu0 %v1016_v2  ;;  %v621_v2 = vld [vmem:[#allocation9 + $0x78] sm:$0xff] }
 0x129   :  { %1030 = vmatprep.subr.bf16.mxu0 %v1260_v0  ;;  %1026 = vmatpush3.bf16.msra.mxu1 %v1025_v12  ;;  %v1040_v4 = vpack.c.bf16 %v621_v2, %v620_v63  ;;  %v886_v12 = vld [vmem:[#allocation11 + $0x1] ss:$0 sm:$0xff] }
 0x12a   :  { %1027 = vmatprep.subr.bf16.mxu1 %v1260_v0 }
 0x1fa   :  { %v944_v16 = vpop.f32.mrb[2].mxu0 }
 0x1fb   :  { %v281_v17 = vadd.f32 %v944_v16, %v279_v14  ;;  %v269_v18 = vpop.f32.mrb[3].mxu0  ;;  %v493_v14 = vld [vmem:[#allocation9 + $0x30] sm:$0xff] }
 0x1fc   :  { %v280_v19 = vadd.f32 %v278_v15, %v269_v18  ;;  %v494_v15 = vld [vmem:[#allocation9 + $0x38] sm:$0xff] }
 0x1fd   :  { %1072 = vtanh.f32 %v281_v17  ;;  %v1028_v16 = vpack.c.bf16 %v494_v15, %v493_v14  ;;  %v387_v17 = vadd.s32 4294967288, %v1435_v28 }
 0x1fe   :  { %1074 = vtanh.f32 %v280_v19 }
 0x1ff   :  { %1029 = vmatpush3.bf16.msra.mxu1 %v1028_v16  ;;  %v390_v19 = vsub.s32 %v387_v17, %v1437_v29 }
 0x200   :  { %1042 = vmatprep.subr.bf16.mxu1 %v1260_v0 }
 0x207   :  { %v1073_v21 = vpop.eup %1072 }
 0x208   :  { %v1075_v22 = vpop.eup %1074  ;;  %v289_v25 = vmul.f32 %v1073_v21, %v881_v20 }
 0x209   :  { %v288_v23 = vmul.f32 %v1075_v22, %v881_v20 }
 0x20a   :  { %v293_v26 = vsel %vm116_vm2, %v289_v25, 0.0  ;;  %v400_v25 = vld [vmem:[%s1599_s5] sm:$0x3] }
 0x20b   :  { %v290_v24 = vsel %vm116_vm2, %v288_v23, 0.0 }
 0x20c   :  { %291 = vadd.xlane.f32.xlu0 %v290_v24 }
 0x210   :  { %294 = vadd.xlane.f32.xlu0 %v293_v26 }
 0x299   :  { %v292_v30 = vpop.xlane.xlu0 %291 }
 0x29a   :  { %v303_v33 = vrot.slane %v292_v30, %v1441_v31 }
 0x29d   :  { %v295_v32 = vpop.xlane.xlu0 %294 }
 0x29e   :  { %v307_v34 = vrot.slane %v295_v32, %v1441_v31 }
 0x2a0   :  { %v309_v35 = vsel %vm308_vm5, %v307_v34, %v303_v33 }
 0x2a1   :  { %v312_v36 = vsel %vm311_vm6, %v309_v35, -inf }
 0x2a2   :  { %313 = vmax.xlane.f32.xlu1 %v312_v36 }
 0x32f   :  { %v314_v40 = vpop.xlane.xlu1 %313 }
 0x330   :  { %v319_v41 = vrot.slane %v314_v40, %v318_v38  ;;  %v323_v42 = vrot.slane %v314_v40, %v322_v39 }
 0x332   :  { %v326_v43 = vsub.f32 %v292_v30, %v319_v41  ;;  %v327_v44 = vsub.f32 %v295_v32, %v323_v42  ;;  %v106_v32 = vld [vmem:[%s105_s19] sm:$0x1] }
 0x333   :  { %107 = vst [vmem:[#allocation3 + $0x1] sm:$0x1] %v106_v32  ;;  %v743_v32 = vld [vmem:[%s1604_s10 + $0x18] sm:$0xff] }
 0x334   :  { %v328_v45 = vmul.f32 1.442695, %v326_v43  ;;  %v330_v46 = vmul.f32 1.442695, %v327_v44 }
 0x336   :  { %1076 = vpow2.f32 %v328_v45 }
 0x337   :  { %1078 = vpow2.f32 %v330_v46 }
 0x340   :  { %v1077_v47 = vpop.eup %1076 }
 0x341   :  { %v1079_v48 = vpop.eup %1078  ;;  %335 = vperm.xlu1 %1070, %v1077_v47  }
 0x342   :  { %338 = vperm.xlu0 %1071, %v1079_v48  }
 0x3c0   :  { %v336_v49 = vpop.permute.xlu1 %335 }
 0x3c1   :  { %v339_v50 = vpop.permute.xlu0 %338  ;;  %v343_v51 = vrot.slane %v336_v49, %v1441_v31 }
 0x3c2   :  { %v347_v52 = vrot.slane %v339_v50, %v1441_v31 }
 0x3c4   :  { %v348_v53 = vsel %vm308_vm5, %v347_v52, %v343_v51 }
 0x3c5   :  { %v350_v54 = vsel %vm311_vm6, %v348_v53, 0.0  ;;  %v607_v53 = vld [vmem:[#allocation2 + $0x2] sm:$0x3] }
 0x3c6   :  { %351 = vadd.xlane.f32.xlu1 %v350_v54  ;;  %v614_v54 = vld [vmem:[#allocation9 + $0x40] sm:$0xff] }
 0x3d7   :  { %483 = vrot.lane.b32.xlu1 %v1459_v13, %s1264_s1 }
 0x3db   :  { %609 = vrot.lane.b32.xlu1 %v607_v53, %s1264_s1 }
 0x453   :  { %v352_v55 = vpop.xlane.xlu1 %351 }
 0x454   :  { %v357_v56 = vrot.slane %v352_v55, %v318_v38  ;;  %v361_v57 = vrot.slane %v352_v55, %v322_v39  ;;  %v615_v55 = vld [vmem:[#allocation9 + $0x48] sm:$0xff] }
 0x456   :  { %1080 = vrcp.f32 %v357_v56  ;;  %v616_v56 = vld [vmem:[#allocation9 + $0x50] sm:$0xff] }
 0x457   :  { %1082 = vrcp.f32 %v361_v57  ;;  %v484_v33 = vpop.permute.xlu1 %483  ;;  %v1031_v57 = vpack.c.bf16 %v615_v55, %v614_v54 }
 0x45b   :  { %v610_v7 = vpop.permute.xlu1 %609 }
 0x460   :  { %v1081_v58 = vpop.eup %1080 }
 0x461   :  { %v365_v59 = vmul.f32 %v1081_v58, %v1077_v47  ;;  %v1083_v60 = vpop.eup %1082  ;;  %v617_v58 = vld [vmem:[#allocation9 + $0x58] sm:$0xff] }
 0x462   :  { %v367_v61 = vmul.f32 %v1083_v60, %v1079_v48  ;;  %v618_v60 = vld [vmem:[#allocation9 + $0x60] sm:$0xff] }
 0x463   :  { %371 = vperm.xlu0 %1071, %v365_v59   ;;  %v1034_v59 = vpack.c.bf16 %v617_v58, %v616_v56 }
 0x467   :  { %374 = vperm.xlu0 %1071, %v367_v61   ;;  %v619_v61 = vld [vmem:[#allocation9 + $0x68] sm:$0xff] }
 0x468   :  { %v1037_v62 = vpack.c.bf16 %v619_v61, %v618_v60 }
 0x4e2   :  { %v372_v18 = vpop.permute.xlu0 %371 }
 0x4e3   :  { %v379_v21 = vrot.slane %v372_v18, %v1441_v31  ;;  %v391_v22 = vrot.slane %v372_v18, %v390_v19 }
 0x4e6   :  { %v375_v20 = vpop.permute.xlu0 %374 }
 0x4e7   :  { %v383_v23 = vrot.slane %v375_v20, %v1441_v31  ;;  %v395_v24 = vrot.slane %v375_v20, %v390_v19  ;;  %v101_v31 = vld [vmem:[%s100_s25] sm:$0x1] }
 0x4e8   :  { %102 = vst [vmem:[#allocation3] sm:$0x1] %v101_v31 }
 0x4e9   :  { %v384_v26 = vsel %vm308_vm5, %v383_v23, %v379_v21  ;;  %v396_v27 = vsel %vm308_vm5, %v395_v24, %v391_v22 }
 0x4ea   :  { %v399_v30 = vsel %vm398_vm7, %v384_v26, %v396_v27  ;;  %386 = vst.msk [vmem:[#allocation15] sm:$0x3] %vm311_vm6, %v384_v26  ;;  %v740_v27 = vld [vmem:[%s1604_s10] sm:$0xff] }
 0x4eb   :  { %v401_v29 = vmul.f32 %v400_v25, %v399_v30  ;;  %v741_v30 = vld [vmem:[%s1604_s10 + $0x8] sm:$0xff] }
 0x4ec   :  { %v1043_v31 = vpack.c.bf16 %v741_v30, %v740_v27 }
 0x4ed   :  { %950 = vmatmul.mubr.msk.f32.vlgmr.msra.gmra.mrb[4].mxu0 %vm404_vm8, %v401_v29  ;;  %v742_v29 = vld [vmem:[%s1604_s10 + $0x10] sm:$0xff] }
 0x4ee   :  { %987 = vmatprep.mubr.msk.f32.mxu0 %vm1261_vm0, %v1262_v1  ;;  %1032 = vmatpush3.bf16.msra.mxu0 %v1031_v57 }
 0x4ef   :  { %v108_v38 = vld [vmem:[#allocation3] sm:$0x3]  ;;  %1033 = vmatprep.subr.bf16.mxu0 %v1260_v0 }
 0x4f2   :  { %1035 = vmatpush3.bf16.msra.mxu0 %v1034_v59 }
 0x4f3   :  { %1036 = vmatprep.subr.bf16.mxu0 %v1260_v0 }
 0x4f6   :  { %1038 = vmatpush3.bf16.msra.mxu0 %v1037_v62 }
 0x4f7   :  { %1039 = vmatprep.subr.bf16.mxu0 %v1260_v0 }
 0x4fa   :  { %1041 = vmatpush3.bf16.msra.mxu0 %v1040_v4 }
 0x5c0   :  { %v1484_v34 = vpop.f32.mrb[4].mxu0 }
 0x5c1   :  { %v486_v35 = vsel %vm116_vm2, %v1484_v34, %v484_v33  ;;  %v951_v36 = vpop.f32.mrb[5].mxu0  ;;  %v1046_v33 = vpack.c.bf16 %v743_v32, %v742_v29 }
 0x5c2   :  { %969 = vmatmul.mubr.msk.f32.vlgmr.msra.gmra.mrb[0].mxu1 %vm500_vm9, %v486_v35  ;;  %v744_v35 = vld [vmem:[%s1604_s10 + $0x20] sm:$0xff]  ;;  %v745_v36 = vld [vmem:[%s1604_s10 + $0x28] sm:$0xff] }
 0x5c3   :  { %1006 = vmatprep.mubr.msk.f32.mxu1 %vm1261_vm0, %v1262_v1  ;;  %1044 = vmatpush3.bf16.msra.mxu1 %v1043_v31 }
 0x5c4   :  { %1045 = vmatprep.subr.bf16.mxu1 %v1260_v0 }
 0x5c7   :  { %1047 = vmatpush3.bf16.msra.mxu1 %v1046_v33 }
 0x5c8   :  { %1048 = vmatprep.subr.bf16.mxu1 %v1260_v0 }
 0x695   :  { %v570_v39 = vpop.f32.mrb[0].mxu1 }
 0x696   :  { %v571_v40 = vadd.f32 %v883_v37, %v570_v39  ;;  %v970_v41 = vpop.f32.mrb[1].mxu1  ;;  %v1049_v37 = vpack.c.bf16 %v745_v36, %v744_v35  ;;  %v747_v39 = vld [vmem:[%s1604_s10 + $0x38] sm:$0xff] }
 0x698   :  { %v574_v42 = vadd.f32 %v571_v40, %v108_v38  ;;  %v746_v38 = vld [vmem:[%s1604_s10 + $0x30] sm:$0xff]  ;;  %1050 = vmatpush3.bf16.msra.mxu1 %v1049_v37  ;;  %s1266_s10 = smov [#allocation13]  }
 0x699   :  { %v1052_v41 = vpack.c.bf16 %v747_v39, %v746_v38  ;;  %1051 = vmatprep.subr.bf16.mxu1 %v1260_v0  ;;  %s844_s9 = sshll.u32 %s1266_s10, 4  ;;  %s845_s9 = int_to_ptr.vmem [resolvable:$true] %s844_s9 }
 0x69a   :  { %v885_v43 = vmul.f32 -1.442695, %v574_v42  ;;  %s1178_s30 = scalar_lea.vmem %s845_s9, 64  ;;  %p1183_p2 = scmp.lt.s32.totalorder %s845_s9, %s845_s9 }
 0x69b   :  { %p1179_p1 = scmp.ne.s32.totalorder %s845_s9, %s1178_s30  ;;  %p1184_p3 = scmp.lt.s32.totalorder %s1178_s30, %s1178_s30 }
 0x69c   :  { %1084 = vpow2.f32 %v885_v43  ;;  %1053 = vmatpush3.bf16.msra.mxu1 %v1052_v41 }
 0x69d   :  { %1086 = vtanh.f32 %v574_v42  ;;  %p1185_p4 = por %p1184_p3, %p1183_p2 }
 0x69f   :  { %p1186_p5 = pnand %p1185_p4, %p1179_p1 }
 0x6a6   :  { %v1085_v44 = vpop.eup %1084 }
 0x6a7   :  { %v578_v45 = vadd.f32 1.0, %v1085_v44  ;;  %v1087_v1 = vpop.eup %1086 }
 0x6a9   :  { %1088 = vrcp.f32 %v578_v45 }
 0x6b3   :  { %v1089_v47 = vpop.eup %1088 }
 0x6b4   :  { %v582_v48 = vsel %vm1493_vm12, %v1087_v1, %v1089_v47 }
 0x6b5   :  { %585 = vrot.lane.b32.xlu0 %v582_v48, %s1265_s6  ;;  %v583_v51 = vmul.f32 %v582_v48, %v1459_v13 }
 0x727   :  { %v586_v49 = vpop.permute.xlu0 %585 }
 0x728   :  { %v588_v50 = vmul.f32 %v586_v49, %v582_v48 }
 0x72a   :  { %590 = vrot.lane.b32.xlu0 %v588_v50, %s1264_s1 }
 0x79c   :  { %v591_v52 = vpop.permute.xlu0 %590 }
 0x79d   :  { %v593_v28 = vadd.f32 %v591_v52, %v583_v51 }
 0x79f   :  { %1090 = vtanh.f32 %v593_v28 }
 0x7a9   :  { %v1091_v3 = vpop.eup %1090 }
 0x7aa   :  { %596 = vrot.lane.b32.xlu0 %v1091_v3, %s1265_s6 }
 0x81c   :  { %v597_v5 = vpop.permute.xlu0 %596 }
 0x81d   :  { %v599_v6 = vmul.f32 %v597_v5, %v582_v48 }
 0x81f   :  { %601 = vrot.lane.b32.xlu0 %v599_v6, %s1264_s1 }
 0x891   :  { %v602_v8 = vpop.permute.xlu0 %601 }
 0x892   :  { %v604_v9 = vsel %vm116_vm2, %v602_v8, %v593_v28  ;;  %v612_v10 = vsel %vm116_vm2, %v602_v8, %v610_v7 }
 0x893   :  { %606 = vst.msk [vmem:[#allocation2] sm:$0x3] %vm95_vm1, %v604_v9  ;;  %988 = vmatmul.mubr.msk.f32.vlgmr.msra.gmra.mrb[6].mxu0 %vm500_vm9, %v612_v10 }
 0x89a   :  { %v731_v11 = vld [vmem:[#allocation2] sm:$0x3] }
 0x89b   :  { %733 = vst.msk [vmem:[#allocation13] sm:$0x3] %vm95_vm1, %v731_v11 }
 0x966   :  { %v696_v13 = vpop.f32.mrb[6].mxu0 }
 0x967   :  { %v697_v14 = vadd.f32 %v886_v12, %v696_v13  ;;  %v989_v15 = vpop.f32.mrb[7].mxu0 }
 0x969   :  { %v888_v16 = vmul.f32 -1.442695, %v697_v14 }
 0x96b   :  { %1092 = vpow2.f32 %v888_v16 }
 0x96c   :  { %1094 = vtanh.f32 %v697_v14 }
 0x975   :  { %v1093_v17 = vpop.eup %1092 }
 0x976   :  { %v703_v18 = vadd.f32 1.0, %v1093_v17  ;;  %v1095_v19 = vpop.eup %1094 }
 0x978   :  { %1096 = vrcp.f32 %v703_v18 }
 0x982   :  { %v1097_v20 = vpop.eup %1096 }
 0x983   :  { %v707_v21 = vsel %vm1493_vm12, %v1095_v19, %v1097_v20 }
 0x984   :  { %710 = vrot.lane.b32.xlu0 %v707_v21, %s1265_s6  ;;  %v708_v24 = vmul.f32 %v707_v21, %v607_v53 }
 0x9f6   :  { %v711_v22 = vpop.permute.xlu0 %710 }
 0x9f7   :  { %v713_v23 = vmul.f32 %v711_v22, %v707_v21 }
 0x9f9   :  { %715 = vrot.lane.b32.xlu1 %v713_v23, %s1264_s1 }
 0xa6b   :  { %v716_v25 = vpop.permute.xlu1 %715 }
 0xa6c   :  { %v718_v26 = vadd.f32 %v716_v25, %v708_v24 }
 0xa6e   :  { %1098 = vtanh.f32 %v718_v26 }
 0xa78   :  { %v1099_v40 = vpop.eup %1098 }
 0xa79   :  { %721 = vrot.lane.b32.xlu0 %v1099_v40, %s1265_s6 }
 0xa7d   :  { %736 = vrot.lane.b32.xlu0 %v1484_v34, %s1264_s1 }
 0xaeb   :  { %v722_v42 = vpop.permute.xlu0 %721 }
 0xaec   :  { %v724_v43 = vmul.f32 %v722_v42, %v707_v21 }
 0xaee   :  { %726 = vrot.lane.b32.xlu1 %v724_v43, %s1264_s1 }
 0xaef   :  { %v737_v44 = vpop.permute.xlu0 %736 }
 0xb60   :  { %v727_v45 = vpop.permute.xlu1 %726 }
 0xb61   :  { %v729_v46 = vsel %vm116_vm2, %v727_v45, %v718_v26  ;;  %v739_v1 = vsel %vm116_vm2, %v727_v45, %v737_v44 }
 0xb62   :  { %730 = vst.msk [vmem:[#allocation2 + $0x2] sm:$0x3] %vm95_vm1, %v729_v46  ;;  %1007 = vmatmul.mubr.msk.f32.vlgmr.msra.gmra.mrb[2].mxu1 %vm500_vm9, %v739_v1 }
 0xb69   :  { %v732_v47 = vld [vmem:[#allocation2 + $0x2] sm:$0x3] }
 0xb6a   :  { %734 = vst.msk [vmem:[#allocation13 + $0x2] sm:$0x3] %vm95_vm1, %v732_v47 }
 0xb6b   :  { %1189 = shalt.err (!%p1186_p5)
}
 0xb6c   :  { %s1190_s25 = scalar_lea.hbm %s1607_s13, 64 }
 0xb6d   :  { %p1191_p6 = scmp.ne.s32.totalorder %s1607_s13, %s1190_s25  ;;  %p1194_p7 = scmp.lt.u32.totalorder %s1190_s25, %s1607_s13 }
 0xb6f   :  { %p1196_p8 = pnand %p1194_p7, %p1191_p6 }
 0xb71   :  { %1199 = shalt.err (!%p1196_p8)
}
 0xb72   :  { %s1267_s26 = smov 2   ;;  %s1268_s15 = smov [#allocation15]  }
 0xb73   :  { %850 = dma.vmem_to_hbm [thread:$0]  %s845_s9, 64, %s1607_s13, [#allocation14], %s1264_s1, %s1264_s1, %s1267_s26  }
 0xb74   :  { %s857_s16 = sshll.u32 %s1268_s15, 4  ;;  %s858_s16 = int_to_ptr.vmem [resolvable:$true] %s857_s16 }
 0xb75   :  { %s1200_s17 = scalar_lea.vmem %s858_s16, 32  ;;  %p1205_p10 = scmp.lt.s32.totalorder %s858_s16, %s858_s16 }
 0xb76   :  { %p1201_p9 = scmp.ne.s32.totalorder %s858_s16, %s1200_s17  ;;  %p1206_p11 = scmp.lt.s32.totalorder %s1200_s17, %s1200_s17 }
 0xb78   :  { %p1207_p12 = por %p1206_p11, %p1205_p10 }
 0xb7a   :  { %p1208_p13 = pnand %p1207_p12, %p1201_p9 }
 0xb7c   :  { %1211 = shalt.err (!%p1208_p13)
}
 0xb7d   :  { %s1212_s21 = scalar_lea.hbm %s1608_s14, 32 }
 0xb7e   :  { %p1213_p0 = scmp.ne.s32.totalorder %s1608_s14, %s1212_s21  ;;  %p1216_p1 = scmp.lt.u32.totalorder %s1212_s21, %s1608_s14 }
 0xb80   :  { %p1218_p2 = pnand %p1216_p1, %p1213_p0 }
 0xb82   :  { %1221 = shalt.err (!%p1218_p2)
}
 0xb83   :  { %860 = dma.vmem_to_hbm [thread:$0]  %s858_s16, 32, %s1608_s14, [#allocation14]   ;;  %v889_v0 = vld [vmem:[%s1605_s11] ss:$0 sm:$0xff] }
 0xb84   :  { %s1269_s29 = smov [#allocation12]  }
 0xb85   :  { %s835_s10 = sshll.u32 %s1269_s29, 4  ;;  %s836_s10 = int_to_ptr.vmem [resolvable:$true] %s835_s10 }
 0xb86   :  { %s1222_s9 = scalar_lea.vmem %s836_s10, 32  ;;  %p1227_p4 = scmp.lt.s32.totalorder %s836_s10, %s836_s10 }
 0xb87   :  { %p1223_p3 = scmp.ne.s32.totalorder %s836_s10, %s1222_s9  ;;  %p1228_p5 = scmp.lt.s32.totalorder %s1222_s9, %s1222_s9 }
 0xb89   :  { %p1229_p6 = por %p1228_p5, %p1227_p4 }
 0xb8b   :  { %p1230_p7 = pnand %p1229_p6, %p1223_p3 }
 0xc35   :  { %v824_v34 = vpop.f32.mrb[2].mxu1 }
 0xc36   :  { %v825_v48 = vadd.f32 %v889_v0, %v824_v34  ;;  %v1008_v49 = vpop.f32.mrb[3].mxu1 }
 0xc38   :  { %828 = vst [vmem:[#allocation12] sm:$0x3] %v825_v48 }
 0xc39   :  { %1233 = shalt.err (!%p1230_p7)
}
 0xc3a   :  { %s1234_s23 = scalar_lea.hbm %s1606_s12, 32 }
 0xc3b   :  { %p1235_p8 = scmp.ne.s32.totalorder %s1606_s12, %s1234_s23  ;;  %p1238_p9 = scmp.lt.u32.totalorder %s1234_s23, %s1606_s12 }
 0xc3d   :  { %p1240_p10 = pnand %p1238_p9, %p1235_p8 }
 0xc3f   :  { %1243 = shalt.err (!%p1240_p10)
}
 0xc40   :  { %838 = dma.vmem_to_hbm [thread:$0]  %s836_s10, 32, %s1606_s12, [#allocation8]  }
 0xc41   :  { %1250 = dma.done.wait [#allocation8], 32  }
 0xc42   :  { %1251 = vsyncadd [#allocation8], 4294967264 }
 0xc43   :  { %1252 = dma.done.wait [#allocation14], 96  }
 0xc44   :  { %1253 = vsyncadd [#allocation14], 4294967200 }
 0xc45   :  { %870 = vsyncpa [#allocation7], 1 }
 0xc46   :  { %871 = vsyncpa [#allocation10], 1 }
 0xc47   :  { %872 = vsyncpa [#allocation8], 1 }
 0xc48   :  { %873 = vsyncpa [#allocation14], 1 }

</bundles_post_ra>
